<compile_context>
chip_gen: v7x
topology: tpu7x:2x2x1
jax: 0.10.0
libtpu: 0.0.40
codegen_flags: <defaults>
</compile_context>

<pallas_src>
import functools

import jax
import jax.numpy as jnp
from jax.experimental import pallas as pl
from jax.experimental.pallas import tpu as pltpu


def _round_up(x, m):
    return (x + m - 1) // m * m


def _tpu_generation():
    try:
        kind = jax.devices()[0].device_kind.lower()
    except Exception:
        return 0
    for g in (7, 6, 5):
        if f"v{g}" in kind:
            return g
    return 0


def _pick_batch_tile(B, T, desired):
    """Largest divisor of B <= desired with (d*T) % 8 == 0 (sublane aligned)."""
    desired = max(1, min(B, desired))
    divs = [d for d in range(1, B + 1) if B % d == 0]
    ok = [d for d in divs if (d * T) % 8 == 0]
    if not ok:
        return B          # full-array block: exempt from the (8,128) rule
    under = [d for d in ok if d <= desired]
    return max(under) if under else min(ok)


# ----------------------------------------------------------------------------
# Pallas kernel: the whole TCN stack, fused.
# Activations live as (M, Cp) rows = batch_tile whole sequences stacked along
# the sublane axis (row = b*T + t), channels (padded to 128) on the lane axis.
# ----------------------------------------------------------------------------
def _tcn_stack_kernel(*refs, layer_meta, ksize, seq_len, compute_dtype):
    x_ref, *w_refs, o_ref = refs
    M = x_ref.shape[0]

    # Element-wise math in f32 (cheap/correct on v5e too); MXU inputs are
    # cast to compute_dtype right before each dot.
    h = x_ref[...].astype(jnp.float32)

    # Position of each row inside its own sequence (the block holds
    # batch_tile whole sequences), for per-sequence causal masking.
    t_idx = jax.lax.broadcasted_iota(jnp.int32, (M, 1), 0) % seq_len

    def im2col_dot(a_f32, w_ref, b_ref, dilation):
        # a_f32: (M, cpi) f32 ; w_ref: (K*cpi, Nout) ; b_ref: (1, Nout) f32
        a_c = a_f32.astype(compute_dtype)            # single cast of the input
        cols = []
        for j in range(ksize):
            shift = (ksize - 1 - j) * dilation        # static Python int
            if shift == 0:
                cols.append(a_c)
            elif shift >= seq_len:
                cols.append(jnp.zeros_like(a_c))      # tap fully out of range
            else:
                # xs[t] = a[t - shift] within a sequence, 0 for t < shift.
                rolled = pltpu.roll(a_f32, shift, axis=0)   # 32-bit sublane rotate (XLU)
                col = jnp.where(t_idx >= shift, rolled, 0.0)
                cols.append(col.astype(compute_dtype))
        slab = cols[0] if ksize == 1 else jnp.concatenate(cols, axis=1)
        acc = jnp.dot(slab, w_ref[...], preferred_element_type=jnp.float32)
        return acc + b_ref[...]                        # f32 bias add

    idx = 0
    for dilation, has_down in layer_meta:
        w1, b1, w2, b2 = w_refs[idx:idx + 4]
        idx += 4
        inp = h
        nout = w1.shape[1]
        cpo = nout // 2 if has_down else nout

        # conv1 (+ fused 1x1 downsample in the extra output columns).
        fused = im2col_dot(inp, w1, b1, dilation)      # (M, nout) f32
        z = jnp.maximum(fused[:, :cpo], 0.0)           # relu1 (dropout1 = id)
        res = fused[:, cpo:] if has_down else inp      # residual path

        z = jnp.maximum(im2col_dot(z, w2, b2, dilation), 0.0)   # relu2 (dropout2 = id)
        h = jnp.maximum(z + res, 0.0)                  # final relu

    o_ref[...] = h.astype(o_ref.dtype)


# ----------------------------------------------------------------------------
# Wrapper: PyTorch-style NCL in (and by default NCL out), single fused
# pallas_call over batch tiles.
# ----------------------------------------------------------------------------
def temporal_conv_net(x_ncl, layers, *, kernel_size,
                      compute_dtype=jnp.bfloat16, batch_tile=None,
                      out_format="NCL"):
    """x_ncl: (B, C_in, T) -> (B, C_last, T) [NCL] or (B, T, C_last) [NTC]."""
    B, c_in, T = x_ncl.shape
    cp_in = layers[0]["cp_in"]
    cp_out = layers[-1]["cp_out"]
    c_out = layers[-1]["c_out"]
    dsz = jnp.dtype(compute_dtype).itemsize

    # Generation-aware VMEM budget / row target.
    gen = _tpu_generation()
    if gen == 7:
        vmem_budget, row_target = 40 << 20, 2048      # 64 MiB physical VMEM
    elif gen in (5, 6):
        vmem_budget, row_target = 96 << 20, 8192      # 128 MiB physical VMEM
    else:
        vmem_budget, row_target = 32 << 20, 2048      # conservative default

    # Rough per-row VMEM cost: double-buffered in/out blocks + the peak set of
    # live f32/compute_dtype intermediates of any layer.
    per_row = 2 * dsz * cp_in + 2 * dsz * cp_out
    peak_live, weight_bytes = 0, 0
    for layer in layers:
        cpi, cpo = layer["cp_in"], layer["cp_out"]
        nout = layer["b1"].shape[1]
        live1 = (4 * cpi + dsz * cpi + dsz * kernel_size * cpi
                 + 4 * nout + 4 * cpo + 4 * cpo)                   # conv1 phase
        live2 = (4 * cpo + dsz * cpo + dsz * kernel_size * cpo
                 + 4 * cpo + 4 * cpo)                              # conv2 phase
        peak_live = max(peak_live, live1, live2)
        weight_bytes += 2 * (dsz * (layer["w1"].size + layer["w2"].size)
                             + 4 * (layer["b1"].size + layer["b2"].size))
    per_row += peak_live
    rows_budget = int((vmem_budget * 0.6 - weight_bytes) // per_row)
    rows_cap = max(T, min(row_target, max(T, rows_budget)))

    if batch_tile is None:
        batch_tile = max(1, min(B, rows_cap // max(T, 1)))
        if B >= 2:   # keep grid extent >= 2: v7x megacore split + pipelining
            batch_tile = min(batch_tile, max(1, B // 2))
    batch_tile = _pick_batch_tile(B, T, batch_tile)
    M = batch_tile * T
    assert M % T == 0      # layout assumption: rows are ordered b*T + t
    grid = (B // batch_tile,)

    # Channels-last, lane-dense (pad channels to cp_in), sequences on rows.
    x = jnp.transpose(x_ncl, (0, 2, 1)).astype(jnp.float32)      # (B, T, C_in)
    x = jnp.pad(x, ((0, 0), (0, 0), (0, cp_in - c_in)))
    x = x.reshape(B * T, cp_in).astype(compute_dtype)

    const_map = lambda i: (0, 0)
    inputs = [x]
    in_specs = [pl.BlockSpec((M, cp_in), lambda i: (i, 0))]
    layer_meta = []
    for layer in layers:
        layer_meta.append((layer["dilation"], layer["has_down"]))
        for name in ("w1", "b1", "w2", "b2"):
            arr = layer[name]
            # Weights feed the MXU in compute_dtype; biases stay f32.
            arr = arr.astype(jnp.float32 if name in ("b1", "b2")
                             else compute_dtype)
            inputs.append(arr)
            in_specs.append(pl.BlockSpec(arr.shape, const_map))

    kernel = functools.partial(
        _tcn_stack_kernel, layer_meta=tuple(layer_meta), ksize=kernel_size,
        seq_len=T, compute_dtype=compute_dtype)

    out = pl.pallas_call(
        kernel,
        out_shape=jax.ShapeDtypeStruct((B * T, cp_out), compute_dtype),
        grid=grid,
        in_specs=in_specs,
        out_specs=pl.BlockSpec((M, cp_out), lambda i: (i, 0)),
        compiler_params=pltpu.CompilerParams(
            dimension_semantics=("parallel",),
            vmem_limit_bytes=vmem_budget),
    )(*inputs)

    out = out.reshape(B, T, cp_out)[:, :, :c_out]       # (B, T, C_last)
    if out_format == "NCL":
        out = jnp.transpose(out, (0, 2, 1))              # (B, C_last, T)
    return out


# ----------------------------------------------------------------------------
# Parameter init (deterministic). Mirrors nn.Conv1d (Cout, Cin, K) with the
# weight_norm reparametrization w = g * v / ||v|| (norm over (Cin, K)).
# Produces per-layer lane-padded im2col weights (conv1 has the 1x1 downsample
# fused into extra output columns at the shift==0 tap) plus the raw unpadded
# weights for the pure-JAX reference.
# ----------------------------------------------------------------------------
def init_tcn_params(key, num_inputs, num_channels, kernel_size):
    layers = []
    for i, cout in enumerate(num_channels):
        cin = num_inputs if i == 0 else num_channels[i - 1]
        cpi = _round_up(cin, 128)
        cpo = _round_up(cout, 128)
        key, *ks = jax.random.split(key, 9)

        def weight_norm(v_key, g_key, shape):
            v = 0.01 * jax.random.normal(v_key, shape, jnp.float32)
            g = jnp.abs(jax.random.normal(g_key, (shape[0], 1, 1),
                                          jnp.float32)) + 0.5
            nrm = jnp.sqrt(jnp.sum(v * v, axis=(1, 2), keepdims=True)) + 1e-12
            return g * v / nrm

        w1 = weight_norm(ks[0], ks[1], (cout, cin, kernel_size))
        w2 = weight_norm(ks[2], ks[3], (cout, cout, kernel_size))
        b1 = 0.01 * jax.random.normal(ks[4], (cout,), jnp.float32)
        b2 = 0.01 * jax.random.normal(ks[5], (cout,), jnp.float32)
        has_down = cin != cout
        wd = bd = None
        if has_down:
            wd = 0.01 * jax.random.normal(ks[6], (cout, cin), jnp.float32)
            bd = 0.01 * jax.random.normal(ks[7], (cout,), jnp.float32)

        # conv1 im2col, with the downsample fused as extra output columns in
        # the shift==0 tap block (j == K-1).
        nout1 = 2 * cpo if has_down else cpo
        W1 = jnp.zeros((kernel_size * cpi, nout1), jnp.float32)
        for j in range(kernel_size):
            W1 = W1.at[j * cpi:j * cpi + cin, :cout].set(w1[:, :, j].T)
        B1 = jnp.zeros((1, nout1), jnp.float32).at[0, :cout].set(b1)
        if has_down:
            j0 = (kernel_size - 1) * cpi
            W1 = W1.at[j0:j0 + cin, cpo:cpo + cout].set(wd.T)
            B1 = B1.at[0, cpo:cpo + cout].set(bd)

        # conv2 im2col (cout -> cout).
        W2 = jnp.zeros((kernel_size * cpo, cpo), jnp.float32)
        for j in range(kernel_size):
            W2 = W2.at[j * cpo:j * cpo + cout, :cout].set(w2[:, :, j].T)
        B2 = jnp.zeros((1, cpo), jnp.float32).at[0, :cout].set(b2)

        layer = {"dilation": 2 ** i, "has_down": has_down,
                 "cp_in": cpi, "cp_out": cpo, "c_out": cout,
                 "w1": W1, "b1": B1, "w2": W2, "b2": B2,
                 "raw": {"w1": w1, "b1": b1, "w2": w2, "b2": b2}}
        if has_down:
            layer["raw"]["wd"] = wd
            layer["raw"]["bd"] = bd
        layers.append(layer)
    return layers


# ----------------------------------------------------------------------------
# Pure-JAX reference (lax.conv_general_dilated on the unpadded weights).
# Weights / input are rounded through compute_dtype so the reference matches
# the kernel's storage precision.
# ----------------------------------------------------------------------------
def _ref_conv1d(x, w, b, pad, dil):
    y = jax.lax.conv_general_dilated(
        x, w, window_strides=(1,), padding=[(pad, pad)], rhs_dilation=(dil,),
        dimension_numbers=("NCH", "OIH", "NCH"))
    return y[:, :, : x.shape[2]] + b[None, :, None]       # Chomp1d(pad)


def ref_forward(x_ncl, layers, kernel_size, compute_dtype):
    rd = lambda a: a.astype(compute_dtype).astype(jnp.float32)
    x = rd(x_ncl)
    for layer in layers:
        d = layer["dilation"]
        pad = (kernel_size - 1) * d
        raw = layer["raw"]
        h = jax.nn.relu(_ref_conv1d(x, rd(raw["w1"]), raw["b1"], pad, d))
        h = jax.nn.relu(_ref_conv1d(h, rd(raw["w2"]), raw["b2"], pad, d))
        if "wd" in raw:
            res = jnp.einsum("bct,dc->bdt", x, rd(raw["wd"])) \
                  + raw["bd"][None, :, None]
        else:
            res = x
        x = jax.nn.relu(h + res)
    return x


# ----------------------------------------------------------------------------
if __name__ == "__main__":
    key = jax.random.PRNGKey(0)
    B, C_in, T = 2, 4, 16
    num_channels = [8, 8]
    kernel_size = 2

    k_x, k_p = jax.random.split(key)
    x = jax.random.normal(k_x, (B, C_in, T), jnp.float32)     # PyTorch NCL
    layers = init_tcn_params(k_p, C_in, num_channels, kernel_size)

    # 1) f32 MXU path: tight check of the fused kernel math.
    out_f32 = jax.block_until_ready(
        temporal_conv_net(x, layers, kernel_size=kernel_size,
                          compute_dtype=jnp.float32))
    ref_f32 = jax.block_until_ready(
        ref_forward(x, layers, kernel_size, jnp.float32))
    assert out_f32.shape == (B, num_channels[-1], T), out_f32.shape
    err32 = float(jnp.max(jnp.abs(out_f32 - ref_f32)))
    assert jnp.allclose(out_f32, ref_f32, rtol=1e-4, atol=1e-5), err32

    # 2) bf16 storage / MXU inputs / output with f32 accumulation (perf config).
    out_b16 = jax.block_until_ready(
        temporal_conv_net(x, layers, kernel_size=kernel_size,
                          compute_dtype=jnp.bfloat16))
    ref_b16 = jax.block_until_ready(
        ref_forward(x, layers, kernel_size, jnp.bfloat16))
    err16 = float(jnp.max(jnp.abs(out_b16.astype(jnp.float32) - ref_b16)))
    assert jnp.allclose(out_b16.astype(jnp.float32), ref_b16,
                        rtol=5e-2, atol=3e-2), err16

    print("KERNEL_OK")
</pallas_src>

<mosaic_0001>
module attributes {stable_mosaic.version = 11 : i64} {
  func.func @_tcn_stack_kernel(%arg0: i32, %arg1: memref<16x128xf32, #tpu.memory_space<vmem>>, %arg2: memref<256x256xf32, #tpu.memory_space<vmem>>, %arg3: memref<1x256xf32, #tpu.memory_space<vmem>>, %arg4: memref<256x128xf32, #tpu.memory_space<vmem>>, %arg5: memref<1x128xf32, #tpu.memory_space<vmem>>, %arg6: memref<256x128xf32, #tpu.memory_space<vmem>>, %arg7: memref<1x128xf32, #tpu.memory_space<vmem>>, %arg8: memref<256x128xf32, #tpu.memory_space<vmem>>, %arg9: memref<1x128xf32, #tpu.memory_space<vmem>>, %arg10: memref<16x128xf32, #tpu.memory_space<vmem>>) attributes {dimension_semantics = [#tpu.dimension_semantics<parallel>], iteration_bounds = array<i64: 2>, scalar_prefetch = 0 : i64, scratch_operands = 0 : i64, tpu.core_type = #tpu.core_type<tc>, window_params = [{transform_indices = @transform_0, window_bounds = array<i64: 16, 128>}, {pipeline_mode = #tpu.pipeline_mode<synchronous>, transform_indices = @transform_1, window_bounds = array<i64: 256, 256>}, {pipeline_mode = #tpu.pipeline_mode<synchronous>, transform_indices = @transform_2, window_bounds = array<i64: 1, 256>}, {pipeline_mode = #tpu.pipeline_mode<synchronous>, transform_indices = @transform_3, window_bounds = array<i64: 256, 128>}, {pipeline_mode = #tpu.pipeline_mode<synchronous>, transform_indices = @transform_4, window_bounds = array<i64: 1, 128>}, {pipeline_mode = #tpu.pipeline_mode<synchronous>, transform_indices = @transform_5, window_bounds = array<i64: 256, 128>}, {pipeline_mode = #tpu.pipeline_mode<synchronous>, transform_indices = @transform_6, window_bounds = array<i64: 1, 128>}, {pipeline_mode = #tpu.pipeline_mode<synchronous>, transform_indices = @transform_7, window_bounds = array<i64: 256, 128>}, {pipeline_mode = #tpu.pipeline_mode<synchronous>, transform_indices = @transform_8, window_bounds = array<i64: 1, 128>}, {transform_indices = @transform_9, window_bounds = array<i64: 16, 128>}]} {
    %c0 = arith.constant 0 : index
    %c0_0 = arith.constant 0 : index
    %0 = vector.load %arg1[%c0, %c0_0] : memref<16x128xf32, #tpu.memory_space<vmem>>, vector<16x128xf32>
    %1 = tpu.iota {dimensions = array<i32: 0>} : vector<16x1xi32>
    %c16_i32 = arith.constant 16 : i32
    %c0_i32 = arith.constant 0 : i32
    %2 = arith.cmpi eq, %c16_i32, %c0_i32 : i32
    %c1_i32 = arith.constant 1 : i32
    %3 = arith.select %2, %c1_i32, %c16_i32 : i32
    %4 = vector.broadcast %3 : i32 to vector<16x1xi32>
    %5 = arith.remsi %1, %4 : vector<16x1xi32>
    %c0_i32_1 = arith.constant 0 : i32
    %6 = vector.broadcast %c0_i32_1 : i32 to vector<16x1xi32>
    %7 = arith.cmpi ne, %5, %6 : vector<16x1xi32>
    %c0_i32_2 = arith.constant 0 : i32
    %8 = vector.broadcast %c0_i32_2 : i32 to vector<16x1xi32>
    %9 = arith.cmpi slt, %5, %8 : vector<16x1xi32>
    %c0_i32_3 = arith.constant 0 : i32
    %10 = arith.cmpi slt, %3, %c0_i32_3 : i32
    %11 = vector.broadcast %10 : i1 to vector<16x1xi1>
    %12 = vector.broadcast %11 : vector<16x1xi1> to vector<16x1xi1>
    %13 = arith.xori %9, %12 : vector<16x1xi1>
    %14 = arith.andi %13, %7 : vector<16x1xi1>
    %15 = vector.broadcast %3 : i32 to vector<16x1xi32>
    %16 = arith.addi %5, %15 : vector<16x1xi32>
    %17 = arith.select %14, %16, %5 : vector<16x1xi1>, vector<16x1xi32>
    %c1_i32_4 = arith.constant 1 : i32
    %18 = tpu.dynamic_rotate %0 by %c1_i32_4 dim 0 : vector<16x128xf32>, i32 -> vector<16x128xf32>
    %c1_i32_5 = arith.constant 1 : i32
    %19 = vector.broadcast %c1_i32_5 : i32 to vector<16x1xi32>
    %20 = arith.cmpi sge, %17, %19 : vector<16x1xi32>
    %cst = arith.constant 0.000000e+00 : f32
    %21 = vector.shape_cast %20 : vector<16x1xi1> to vector<16x1xi1>
    %22 = vector.broadcast %21 : vector<16x1xi1> to vector<16x128xi1>
    %23 = vector.broadcast %cst : f32 to vector<16x128xf32>
    %24 = arith.select %22, %18, %23 : vector<16x128xi1>, vector<16x128xf32>
    %25 = tpu.concatenate %24, %0 in 1 : vector<16x128xf32>, vector<16x128xf32> -> vector<16x256xf32>
    %c0_6 = arith.constant 0 : index
    %c0_7 = arith.constant 0 : index
    %26 = vector.load %arg2[%c0_6, %c0_7] : memref<256x256xf32, #tpu.memory_space<vmem>>, vector<256x256xf32>
    %cst_8 = arith.constant dense<0.000000e+00> : vector<16x256xf32>
    %27 = tpu.matmul %25, %26, %cst_8 {dimension_numbers = #tpu.dot_dimension_numbers<[1], [0], [0], [1], [0, 0, 1, 1], [], []>} : vector<16x256xf32>, vector<256x256xf32>, vector<16x256xf32> -> vector<16x256xf32>
    %c0_9 = arith.constant 0 : index
    %c0_10 = arith.constant 0 : index
    %28 = vector.load %arg3[%c0_9, %c0_10] : memref<1x256xf32, #tpu.memory_space<vmem>>, vector<1x256xf32>
    %29 = vector.broadcast %28 : vector<1x256xf32> to vector<16x256xf32>
    %30 = arith.addf %27, %29 : vector<16x256xf32>
    %31 = vector.extract_strided_slice %30 {offsets = [0, 0], sizes = [16, 128], strides = [1, 1]} : vector<16x256xf32> to vector<16x128xf32>
    %cst_11 = arith.constant 0.000000e+00 : f32
    %32 = vector.broadcast %cst_11 : f32 to vector<16x128xf32>
    %33 = arith.maximumf %31, %32 : vector<16x128xf32>
    %34 = vector.extract_strided_slice %30 {offsets = [0, 128], sizes = [16, 128], strides = [1, 1]} : vector<16x256xf32> to vector<16x128xf32>
    %c1_i32_12 = arith.constant 1 : i32
    %35 = tpu.dynamic_rotate %33 by %c1_i32_12 dim 0 : vector<16x128xf32>, i32 -> vector<16x128xf32>
    %c1_i32_13 = arith.constant 1 : i32
    %36 = vector.broadcast %c1_i32_13 : i32 to vector<16x1xi32>
    %37 = arith.cmpi sge, %17, %36 : vector<16x1xi32>
    %cst_14 = arith.constant 0.000000e+00 : f32
    %38 = vector.shape_cast %37 : vector<16x1xi1> to vector<16x1xi1>
    %39 = vector.broadcast %38 : vector<16x1xi1> to vector<16x128xi1>
    %40 = vector.broadcast %cst_14 : f32 to vector<16x128xf32>
    %41 = arith.select %39, %35, %40 : vector<16x128xi1>, vector<16x128xf32>
    %42 = tpu.concatenate %41, %33 in 1 : vector<16x128xf32>, vector<16x128xf32> -> vector<16x256xf32>
    %c0_15 = arith.constant 0 : index
    %c0_16 = arith.constant 0 : index
    %43 = vector.load %arg4[%c0_15, %c0_16] : memref<256x128xf32, #tpu.memory_space<vmem>>, vector<256x128xf32>
    %cst_17 = arith.constant dense<0.000000e+00> : vector<16x128xf32>
    %44 = tpu.matmul %42, %43, %cst_17 {dimension_numbers = #tpu.dot_dimension_numbers<[1], [0], [0], [1], [0, 0, 1, 1], [], []>} : vector<16x256xf32>, vector<256x128xf32>, vector<16x128xf32> -> vector<16x128xf32>
    %c0_18 = arith.constant 0 : index
    %c0_19 = arith.constant 0 : index
    %45 = vector.load %arg5[%c0_18, %c0_19] : memref<1x128xf32, #tpu.memory_space<vmem>>, vector<1x128xf32>
    %46 = vector.broadcast %45 : vector<1x128xf32> to vector<16x128xf32>
    %47 = arith.addf %44, %46 : vector<16x128xf32>
    %cst_20 = arith.constant 0.000000e+00 : f32
    %48 = vector.broadcast %cst_20 : f32 to vector<16x128xf32>
    %49 = arith.maximumf %47, %48 : vector<16x128xf32>
    %50 = arith.addf %49, %34 : vector<16x128xf32>
    %cst_21 = arith.constant 0.000000e+00 : f32
    %51 = vector.broadcast %cst_21 : f32 to vector<16x128xf32>
    %52 = arith.maximumf %50, %51 : vector<16x128xf32>
    %c2_i32 = arith.constant 2 : i32
    %53 = tpu.dynamic_rotate %52 by %c2_i32 dim 0 : vector<16x128xf32>, i32 -> vector<16x128xf32>
    %c2_i32_22 = arith.constant 2 : i32
    %54 = vector.broadcast %c2_i32_22 : i32 to vector<16x1xi32>
    %55 = arith.cmpi sge, %17, %54 : vector<16x1xi32>
    %cst_23 = arith.constant 0.000000e+00 : f32
    %56 = vector.shape_cast %55 : vector<16x1xi1> to vector<16x1xi1>
    %57 = vector.broadcast %56 : vector<16x1xi1> to vector<16x128xi1>
    %58 = vector.broadcast %cst_23 : f32 to vector<16x128xf32>
    %59 = arith.select %57, %53, %58 : vector<16x128xi1>, vector<16x128xf32>
    %60 = tpu.concatenate %59, %52 in 1 : vector<16x128xf32>, vector<16x128xf32> -> vector<16x256xf32>
    %c0_24 = arith.constant 0 : index
    %c0_25 = arith.constant 0 : index
    %61 = vector.load %arg6[%c0_24, %c0_25] : memref<256x128xf32, #tpu.memory_space<vmem>>, vector<256x128xf32>
    %cst_26 = arith.constant dense<0.000000e+00> : vector<16x128xf32>
    %62 = tpu.matmul %60, %61, %cst_26 {dimension_numbers = #tpu.dot_dimension_numbers<[1], [0], [0], [1], [0, 0, 1, 1], [], []>} : vector<16x256xf32>, vector<256x128xf32>, vector<16x128xf32> -> vector<16x128xf32>
    %c0_27 = arith.constant 0 : index
    %c0_28 = arith.constant 0 : index
    %63 = vector.load %arg7[%c0_27, %c0_28] : memref<1x128xf32, #tpu.memory_space<vmem>>, vector<1x128xf32>
    %64 = vector.broadcast %63 : vector<1x128xf32> to vector<16x128xf32>
    %65 = arith.addf %62, %64 : vector<16x128xf32>
    %cst_29 = arith.constant 0.000000e+00 : f32
    %66 = vector.broadcast %cst_29 : f32 to vector<16x128xf32>
    %67 = arith.maximumf %65, %66 : vector<16x128xf32>
    %c2_i32_30 = arith.constant 2 : i32
    %68 = tpu.dynamic_rotate %67 by %c2_i32_30 dim 0 : vector<16x128xf32>, i32 -> vector<16x128xf32>
    %c2_i32_31 = arith.constant 2 : i32
    %69 = vector.broadcast %c2_i32_31 : i32 to vector<16x1xi32>
    %70 = arith.cmpi sge, %17, %69 : vector<16x1xi32>
    %cst_32 = arith.constant 0.000000e+00 : f32
    %71 = vector.shape_cast %70 : vector<16x1xi1> to vector<16x1xi1>
    %72 = vector.broadcast %71 : vector<16x1xi1> to vector<16x128xi1>
    %73 = vector.broadcast %cst_32 : f32 to vector<16x128xf32>
    %74 = arith.select %72, %68, %73 : vector<16x128xi1>, vector<16x128xf32>
    %75 = tpu.concatenate %74, %67 in 1 : vector<16x128xf32>, vector<16x128xf32> -> vector<16x256xf32>
    %c0_33 = arith.constant 0 : index
    %c0_34 = arith.constant 0 : index
    %76 = vector.load %arg8[%c0_33, %c0_34] : memref<256x128xf32, #tpu.memory_space<vmem>>, vector<256x128xf32>
    %cst_35 = arith.constant dense<0.000000e+00> : vector<16x128xf32>
    %77 = tpu.matmul %75, %76, %cst_35 {dimension_numbers = #tpu.dot_dimension_numbers<[1], [0], [0], [1], [0, 0, 1, 1], [], []>} : vector<16x256xf32>, vector<256x128xf32>, vector<16x128xf32> -> vector<16x128xf32>
    %c0_36 = arith.constant 0 : index
    %c0_37 = arith.constant 0 : index
    %78 = vector.load %arg9[%c0_36, %c0_37] : memref<1x128xf32, #tpu.memory_space<vmem>>, vector<1x128xf32>
    %79 = vector.broadcast %78 : vector<1x128xf32> to vector<16x128xf32>
    %80 = arith.addf %77, %79 : vector<16x128xf32>
    %cst_38 = arith.constant 0.000000e+00 : f32
    %81 = vector.broadcast %cst_38 : f32 to vector<16x128xf32>
    %82 = arith.maximumf %80, %81 : vector<16x128xf32>
    %83 = arith.addf %82, %52 : vector<16x128xf32>
    %cst_39 = arith.constant 0.000000e+00 : f32
    %84 = vector.broadcast %cst_39 : f32 to vector<16x128xf32>
    %85 = arith.maximumf %83, %84 : vector<16x128xf32>
    %c0_40 = arith.constant 0 : index
    %c0_41 = arith.constant 0 : index
    %86 = vector.load %arg10[%c0_40, %c0_41] : memref<16x128xf32, #tpu.memory_space<vmem>>, vector<16x128xf32>
    tpu.vector_store %arg10[%c0_40, %c0_41], %85 {strides = array<i32>} : memref<16x128xf32, #tpu.memory_space<vmem>>, vector<16x128xf32>,
    return
  }
  func.func @transform_0(%arg0: i32) -> (i32, i32) {
    %c0_i32 = arith.constant 0 : i32
    %c0_i32_0 = arith.constant 0 : i32
    return %arg0, %c0_i32 : i32, i32
  }
  func.func @transform_1(%arg0: i32) -> (i32, i32) {
    %c0_i32 = arith.constant 0 : i32
    %c0_i32_0 = arith.constant 0 : i32
    %c0_i32_1 = arith.constant 0 : i32
    return %c0_i32, %c0_i32_0 : i32, i32
  }
  func.func @transform_2(%arg0: i32) -> (i32, i32) {
    %c0_i32 = arith.constant 0 : i32
    %c0_i32_0 = arith.constant 0 : i32
    %c0_i32_1 = arith.constant 0 : i32
    return %c0_i32, %c0_i32_0 : i32, i32
  }
  func.func @transform_3(%arg0: i32) -> (i32, i32) {
    %c0_i32 = arith.constant 0 : i32
    %c0_i32_0 = arith.constant 0 : i32
    %c0_i32_1 = arith.constant 0 : i32
    return %c0_i32, %c0_i32_0 : i32, i32
  }
  func.func @transform_4(%arg0: i32) -> (i32, i32) {
    %c0_i32 = arith.constant 0 : i32
    %c0_i32_0 = arith.constant 0 : i32
    %c0_i32_1 = arith.constant 0 : i32
    return %c0_i32, %c0_i32_0 : i32, i32
  }
  func.func @transform_5(%arg0: i32) -> (i32, i32) {
    %c0_i32 = arith.constant 0 : i32
    %c0_i32_0 = arith.constant 0 : i32
    %c0_i32_1 = arith.constant 0 : i32
    return %c0_i32, %c0_i32_0 : i32, i32
  }
  func.func @transform_6(%arg0: i32) -> (i32, i32) {
    %c0_i32 = arith.constant 0 : i32
    %c0_i32_0 = arith.constant 0 : i32
    %c0_i32_1 = arith.constant 0 : i32
    return %c0_i32, %c0_i32_0 : i32, i32
  }
  func.func @transform_7(%arg0: i32) -> (i32, i32) {
    %c0_i32 = arith.constant 0 : i32
    %c0_i32_0 = arith.constant 0 : i32
    %c0_i32_1 = arith.constant 0 : i32
    return %c0_i32, %c0_i32_0 : i32, i32
  }
  func.func @transform_8(%arg0: i32) -> (i32, i32) {
    %c0_i32 = arith.constant 0 : i32
    %c0_i32_0 = arith.constant 0 : i32
    %c0_i32_1 = arith.constant 0 : i32
    return %c0_i32, %c0_i32_0 : i32, i32
  }
  func.func @transform_9(%arg0: i32) -> (i32, i32) {
    %c0_i32 = arith.constant 0 : i32
    %c0_i32_0 = arith.constant 0 : i32
    return %arg0, %c0_i32 : i32, i32
  }
}

</mosaic_0001>

<bundles_post_ra>
// kernel: tpu_custom_call.1
= control target key start
LH: loop header
LB: loop body
LE: loop exit
PB: predicated region body
PF: predicated region fallthrough
CT: control target
= control target key end

     0   :  { %s2169_s0 = inlined_call_operand.hbm [shape: f32[32,128], index: 0, kind: input, shape index: {}]   ;;  %s2170_s1 = inlined_call_operand.hbm [shape: f32[256,256], index: 1, kind: input, shape index: {}]   ;;  %s2171_s2 = inlined_call_operand.vmem [shape: f32[1,256], index: 2, kind: input, shape index: {}]   ;;  %s2172_s3 = inlined_call_operand.hbm [shape: f32[256,128], index: 3, kind: input, shape index: {}]   ;;  %s2173_s4 = inlined_call_operand.vmem [shape: f32[1,128], index: 4, kind: input, shape index: {}]   ;;  %s2174_s5 = inlined_call_operand.hbm [shape: f32[256,128], index: 5, kind: input, shape index: {}]   ;;  %s2175_s6 = inlined_call_operand.vmem [shape: f32[1,128], index: 6, kind: input, shape index: {}]   ;;  %s2176_s7 = inlined_call_operand.hbm [shape: f32[256,128], index: 7, kind: input, shape index: {}]   ;;  %s2177_s8 = inlined_call_operand.vmem [shape: f32[1,128], index: 8, kind: input, shape index: {}]   ;;  %s2178_s9 = inlined_call_operand.hbm [shape: f32[32,128], index: 9, kind: output, shape index: {}]  }
   0x1   :  { %2185 = sst [smem:[#allocation18_spill]] %s2177_s8 }
   0x2   :  { %2186 = sst [smem:[#allocation19_spill]] %s2178_s9 }
   0x3   :  { %14 = vsyncpa [#allocation3], 0 }
   0x4   :  { %16 = vsyncpa [#allocation3 + $0x1], 0 }
   0x5   :  { %17 = vsyncpa [#allocation6], 0 }
   0x6   :  { %18 = vsyncpa [#allocation9], 0 }
   0x7   :  { %19 = vsyncpa [#allocation4], 0 }
   0x8   :  { %21 = vsyncpa [#allocation4 + $0x1], 0  ;;  %s1810_s30 = smov 0   ;;  %s1812_s10 = smov 0  }
   0x9   :  { %s1814_s11 = smov 0   ;;  %s1816_s12 = smov 0  }
   0xa LB: > { %2187 = sst [smem:[#allocation16_spill]] %s1734_s30  ;;  %s1831_s13 = sadd.s32 4294967295, %s1746_s12   ;;  %s1746_s12 = sphi %s1816_s12, %s2216_s12   ;;  %s1742_s11 = sphi %s1814_s11, %s2215_s11   ;;  %s1738_s10 = sphi %s1812_s10, %s2214_s10   ;;  %s1734_s30 = sphi %s1810_s30, %s2213_s30  }
   0xb   : > { %s1116_s14 = sadd.s32 4294967294, %s1746_s12   ;;  %p47_p0 = scmp.ne.s32.totalorder %s1738_s10, %s1734_s30 }
   0xc   : > { %p2179_p1 = scmp.eq.s32.totalorder %s1831_s13, 0  ;;  %p245_p3 = scmp.eq.s32.totalorder %s1116_s14, 1 }
   0xd   : > { %p1117_p5 = scmp.ge.s32.totalorder %s1746_s12, 1  ;;  %p252_p7 = scmp.lt.s32.totalorder %s1746_s12, 3 }
   0xe   : > { %p1840_p4 = por %p2179_p1, %p47_p0  ;;  %p1845_p6 = por %p245_p3, %p47_p0 }
   0xf   : > { %p1850_p8 = pnand %p1117_p5, %p252_p7  ;;  %s1748_s18 = smov [#allocation5]  }
  0x10   : > { %s2188_s15 = scalar_select %p1840_p4, 1, 0 }
  0x11   : > { %s2189_s16 = scalar_select %p1845_p6, 1, 0 }
  0x12   : > { %s2191_s17 = scalar_select %p1850_p8, 1, 0 }
  0x13   : > { %2190 = sst [smem:[#allocation17_spill]] %s2189_s16  ;;  %s264_s19 = sshll.u32 %s1748_s18, 4  ;;  %s265_s19 = int_to_ptr.vmem [resolvable:$true] %s264_s19 }
  0x14   : > { %p1457_p9 = pneg %p1850_p8  ;;  %s1749_s21 = smov [#allocation8]  }
  0x15   : > { %s296_s22 = sshll.u32 %s1749_s21, 4  ;;  %s1530_s25 = scalar_lea.hbm %s2170_s1, 8192  ;;  %s297_s22 = int_to_ptr.vmem [resolvable:$true] %s296_s22 }
  0x16   : > { %p1859_p11 = pnand %p1457_p9, %p2179_p1  ;;  %p1531_p12 = scmp.ne.s32.totalorder %s2170_s1, %s1530_s25 }
  0x17   : > { %p1537_p5 = scmp.lt.u32.totalorder %s1530_s25, %s2170_s1 }
  0x18   : > { %p1871_p13 = pneg %p1859_p11 }
  0x1a   : > { %p1533_p0 = pnand %p1871_p13, %p1531_p12 }
  0x1c   : > { %p1534_p3 = pneg %p1533_p0 }
  0x1e   : > { %p1539_p7 = pnand %p1537_p5, %p1534_p3 }
  0x20   : > { %1542 = shalt.err (!%p1539_p7)
}
  0x21   : > { %s1543_s18 = scalar_lea.vmem %s265_s19, 8192  ;;  %p1551_p2 = scmp.lt.s32.totalorder %s265_s19, %s265_s19 }
  0x22   : > { %p1544_p9 = scmp.ne.s32.totalorder %s265_s19, %s1543_s18  ;;  %p1552_p6 = scmp.lt.s32.totalorder %s1543_s18, %s1543_s18 }
  0x24   : > { %p1546_p10 = pnand %p1544_p9, %p1871_p13  ;;  %p1553_p4 = por %p1552_p6, %p1551_p2 }
  0x26   : > { %p1547_p1 = pneg %p1546_p10 }
  0x28   : > { %p1554_p8 = pnand %p1553_p4, %p1547_p1 }
  0x2a   : > { %1557 = shalt.err (!%p1554_p8)
}
  0x2b   : > { %s1750_s21 = smov 256   ;;  %s1751_s23 = smov 16  }
  0x2c   : > { %1460 = dma.hbm_to_vmem [thread:$0]  (!%p1859_p11), %s2170_s1, 8192, %s265_s19, [#allocation6], %s1750_s21, %s1750_s21, %s1751_s23  }
  0x2d   : > { %s1752_s26 = smov [#allocation7]   ;;  %s1558_s16 = scalar_lea.hbm %s2174_s5, 4096 }
  0x2e   : > { %s280_s27 = sshll.u32 %s1752_s26, 4  ;;  %p1559_p1 = scmp.ne.s32.totalorder %s2174_s5, %s1558_s16  ;;  %s281_s27 = int_to_ptr.vmem [resolvable:$true] %s280_s27 }
  0x2f   : > { %p1565_p6 = scmp.lt.u32.totalorder %s1558_s16, %s2174_s5 }
  0x30   : > { %p1561_p2 = pnand %p1559_p1, %p1871_p13 }
  0x32   : > { %p1562_p4 = pneg %p1561_p2 }
  0x34   : > { %p1567_p8 = pnand %p1565_p6, %p1562_p4 }
  0x36   : > { %1570 = shalt.err (!%p1567_p8)
}
  0x37   : > { %s1571_s19 = scalar_lea.vmem %s297_s22, 4096  ;;  %p1579_p3 = scmp.lt.s32.totalorder %s297_s22, %s297_s22 }
  0x38   : > { %p1572_p10 = scmp.ne.s32.totalorder %s297_s22, %s1571_s19  ;;  %p1580_p5 = scmp.lt.s32.totalorder %s1571_s19, %s1571_s19 }
  0x3a   : > { %p1574_p12 = pnand %p1572_p10, %p1871_p13  ;;  %p1581_p7 = por %p1580_p5, %p1579_p3 }
  0x3c   : > { %p1575_p0 = pneg %p1574_p12 }
  0x3e   : > { %p1582_p9 = pnand %p1581_p7, %p1575_p0 }
  0x40   : > { %1585 = shalt.err (!%p1582_p9)
}
  0x41   : > { %s1753_s30 = smov 128   ;;  %s1754_s21 = smov 8  }
  0x42   : > { %1466 = dma.hbm_to_vmem [thread:$0]  (!%p1859_p11), %s2174_s5, 4096, %s297_s22, [#allocation9], %s1753_s30, %s1753_s30, %s1754_s21  }
  0x43   : > { %s1586_s24 = scalar_lea.hbm %s2172_s3, 4096 }
  0x44   : > { %p1587_p1 = scmp.ne.s32.totalorder %s2172_s3, %s1586_s24  ;;  %p1593_p6 = scmp.lt.u32.totalorder %s1586_s24, %s2172_s3 }
  0x46   : > { %p1589_p2 = pnand %p1587_p1, %p1871_p13 }
  0x48   : > { %p1590_p4 = pneg %p1589_p2 }
  0x4a   : > { %p1595_p8 = pnand %p1593_p6, %p1590_p4 }
  0x4c   : > { %1598 = shalt.err (!%p1595_p8)
}
  0x4d   : > { %s1599_s18 = scalar_lea.vmem %s281_s27, 4096  ;;  %p1607_p3 = scmp.lt.s32.totalorder %s281_s27, %s281_s27 }
  0x4e   : > { %p1600_p10 = scmp.ne.s32.totalorder %s281_s27, %s1599_s18  ;;  %p1608_p5 = scmp.lt.s32.totalorder %s1599_s18, %s1599_s18 }
  0x50   : > { %p1602_p12 = pnand %p1600_p10, %p1871_p13  ;;  %p1609_p7 = por %p1608_p5, %p1607_p3 }
  0x52   : > { %p1603_p0 = pneg %p1602_p12 }
  0x54   : > { %p1610_p9 = pnand %p1609_p7, %p1603_p0 }
  0x56   : > { %1613 = shalt.err (!%p1610_p9)
}
  0x57   : > { %1463 = dma.hbm_to_vmem [thread:$0]  (!%p1859_p11), %s2172_s3, 4096, %s281_s27, [#allocation6], %s1753_s30, %s1753_s30, %s1754_s21  }
  0x58   : > { %s1755_s8 = smov [#allocation10]   ;;  %s1614_s24 = scalar_lea.hbm %s2176_s7, 4096 }
  0x59   : > { %s312_s9 = sshll.u32 %s1755_s8, 4  ;;  %p1615_p1 = scmp.ne.s32.totalorder %s2176_s7, %s1614_s24  ;;  %s313_s9 = int_to_ptr.vmem [resolvable:$true] %s312_s9 }
  0x5a   : > { %p1621_p6 = scmp.lt.u32.totalorder %s1614_s24, %s2176_s7 }
  0x5b   : > { %p1617_p2 = pnand %p1615_p1, %p1871_p13 }
  0x5d   : > { %p1618_p4 = pneg %p1617_p2 }
  0x5f   : > { %p1623_p8 = pnand %p1621_p6, %p1618_p4 }
  0x61   : > { %1626 = shalt.err (!%p1623_p8)
}
  0x62   : > { %s1627_s27 = scalar_lea.vmem %s313_s9, 4096  ;;  %p1635_p3 = scmp.lt.s32.totalorder %s313_s9, %s313_s9 }
  0x63   : > { %p1628_p10 = scmp.ne.s32.totalorder %s313_s9, %s1627_s27  ;;  %p1636_p5 = scmp.lt.s32.totalorder %s1627_s27, %s1627_s27 }
  0x65   : > { %p1630_p12 = pnand %p1628_p10, %p1871_p13  ;;  %p1637_p7 = por %p1636_p5, %p1635_p3 }
  0x67   : > { %p1631_p0 = pneg %p1630_p12 }
  0x69   : > { %p1638_p9 = pnand %p1637_p7, %p1631_p0 }
  0x6b   : > { %1641 = shalt.err (!%p1638_p9)
}
  0x6c   : > { %1469 = dma.hbm_to_vmem [thread:$0]  (!%p1859_p11), %s2176_s7, 4096, %s313_s9, [#allocation9], %s1753_s30, %s1753_s30, %s1754_s21  }
  0x6d   : > { %s1951_s28 = sadd.s32 1, %s1746_s12   ;;  %s34_s20 = sadd.s32 1, %s1742_s11 }
  0x6e   : > { %s31_s19 = ssub.s32 %s1746_s12, %s1951_s28  ;;  %p41_p13 = scmp.ne.s32.totalorder %s1742_s11, %s1738_s10 }
  0x6f   : > { %p32_p1 = scmp.eq.s32.totalorder %s31_s19, 0  ;;  %p42_p2 = scmp.eq.s32.totalorder %s1746_s12, 0 }
  0x70   : > { %p2194_p4 = scmp.eq.s32.totalorder %s1831_s13, 1  ;;  %p1482_p8 = scmp.lt.s32.totalorder %s1746_s12, 2 }
  0x71   : > { %s1967_s16 = scalar_select %p32_p1, %s1742_s11, %s34_s20  }
  0x72   : > { %p1961_p6 = por %p2194_p4, %p41_p13  ;;  %p43_p10 = por %p42_p2, %p41_p13 }
  0x73   : > { %s329_s23 = sand.u32 1, %s1742_s11   ;;  %s1145_s9 = sshll.u32 %s1746_s12, 8 }
  0x74   : > { %s1123_s24 = sshll.u32 %s329_s23, 4  ;;  %s1974_s29 = scalar_lea.hbm %s2169_s0, %s1145_s9 }
  0x75   : > { %s333_s14 = scalar_lea.vmem [#allocation2], %s1123_s24  ;;  %p1978_p11 = pnand %p1482_p8, %p43_p10 }
  0x76   : > { %s340_s27 = sshll.u32 %s333_s14, 4  ;;  %s1982_s22 = scalar_lea.sflag [#allocation3], %s329_s23  ;;  %s1976_s27 = int_to_ptr.vmem [resolvable:$true] %s340_s27 }
  0x77   : > { %s1642_s20 = scalar_lea.hbm %s1974_s29, 256  ;;  %p1644_p0 = pneg %p1978_p11 }
  0x78   : > { %p1643_p12 = scmp.ne.s32.totalorder %s1974_s29, %s1642_s20  ;;  %s1647_s9 = scalar_lea.hbm %s2169_s0, 512 }
  0x79   : > { %p1648_p7 = scmp.lt.u32.totalorder %s1974_s29, %s2169_s0  ;;  %p1649_p9 = scmp.lt.u32.totalorder %s1647_s9, %s1642_s20 }
  0x7a   : > { %p1645_p3 = pnand %p1644_p0, %p1643_p12  ;;  %p1651_p1 = scmp.lt.u32.totalorder %s1642_s20, %s1974_s29 }
  0x7b   : > { %p1650_p13 = por %p1649_p9, %p1648_p7 }
  0x7c   : > { %p1646_p5 = pneg %p1645_p3 }
  0x7d   : > { %p1652_p2 = por %p1651_p1, %p1650_p13 }
  0x7f   : > { %p1653_p4 = pnand %p1652_p2, %p1646_p5 }
  0x81   : > { %1656 = shalt.err (!%p1653_p4)
}
  0x82   : > { %s1657_s23 = scalar_lea.vmem %s1976_s27, 256  ;;  %s1756_s14 = smov [#allocation2]  }
  0x83   : > { %p1658_p8 = scmp.ne.s32.totalorder %s1976_s27, %s1657_s23  ;;  %s1662_s19 = sshll.u32 %s1756_s14, 4  ;;  %s1663_s19 = int_to_ptr.vmem [resolvable:$false] %s1662_s19 }
  0x84   : > { %s1664_s24 = scalar_lea.vmem %s1663_s19, 512  ;;  %p1665_p3 = scmp.lt.s32.totalorder %s1976_s27, %s1663_s19 }
  0x85   : > { %p1660_p10 = pnand %p1658_p8, %p1644_p0  ;;  %p1666_p7 = scmp.lt.s32.totalorder %s1664_s24, %s1657_s23 }
  0x87   : > { %p1661_p12 = pneg %p1660_p10  ;;  %p1667_p9 = por %p1666_p7, %p1665_p3 }
  0x89   : > { %p1668_p13 = pnand %p1667_p9, %p1661_p12 }
  0x8b   : > { %1671 = shalt.err (!%p1668_p13)
}
  0x8c   : > { %1473 = dma.hbm_to_vmem [thread:$0]  (!%p1978_p11), %s1974_s29, 256, %s1976_s27, %s1982_s22, %s1753_s30, %s1753_s30, %s1754_s21  }
  0x8d   : > { %p2197_p0 = scmp.ne.s32.totalorder %s2191_s17, 0 }
  0x8e   : > { %s2016_s20 = sand.u32 (!%p2197_p0), 1, %s1738_s10   ;;  %p2198_p5 = scmp.ne.s32.totalorder (!%p2197_p0), %s2188_s15, 0 }
  0x8f   : > { %352 = sbr.rel (%p2197_p0) target bundleno = 1142 (0x476), region = 56  ;;  %s1127_s9 = sshll.u32 (!%p2197_p0), %s2016_s20, 4 }
  0x90   : > { %s355_s25 = scalar_lea.sflag (!%p2197_p0), [#allocation3], %s2016_s20  ;;  %s2022_s18 = scalar_lea.vmem (!%p2197_p0), [#allocation2], %s1127_s9 }
  0x96   : > { %1717 = dma.done.wait (%p2198_p5), %s355_s25, 256  }
  0x97   : > { %1719 = vsyncadd (%p2198_p5), %s355_s25, 4294967040  ;;  %p2199_p11 = scmp.eq.s32.totalorder %s1831_s13, 0 }
  0x99   : > { %1721 = dma.done.wait (%p2199_p11), [#allocation6], 12288   ;;  %p2200_p1 = pmov %p2199_p11 }
  0x9b   : > { %1723 = vsyncadd (%p2200_p1), [#allocation6], 4294955008  ;;  %p2201_p2 = pmov %p2200_p1 }
  0x9c   : > { %p2202_p4 = pmov %p2200_p1 }
  0x9d   : > { %1725 = dma.done.wait (%p2201_p2), [#allocation9], 8192  }
  0x9e   : > { %1727 = vsyncadd (%p2202_p4), [#allocation9], 4294959104  ;;  %v454_v0 = vld [vmem:[#allocation5 + $0x8] sm:$0xff]  ;;  %v456_v1 = vld [vmem:[#allocation5 + $0x18] sm:$0xff]  ;;  %s2207_s23 = sld [smem:[#allocation18_spill]]  ;;  %s408_s14 = scalar_lea.vmem [#allocation11], %s1127_s9 }
  0x9f   : > { %v453_v2 = vld [vmem:[#allocation5] sm:$0xff]  ;;  %v1261_v3 = vpack.c.bf16 %v456_v1, %v454_v0  ;;  %v455_v4 = vld [vmem:[#allocation5 + $0x10] sm:$0xff]  ;;  %v458_v5 = vld [vmem:[#allocation5 + $0x28] sm:$0xff]  ;;  %s1005_s19 = sshll.u32 %s408_s14, 4  ;;  %s1146_s24 = sshll.u32 %s1831_s13, 8  ;;  %s2119_s19 = int_to_ptr.vmem [resolvable:$true] %s1005_s19 }
  0xa0   : > { %v460_v6 = vld [vmem:[#allocation5 + $0x38] sm:$0xff]  ;;  %v1263_v7 = vpack.c.bf16 %v455_v4, %v453_v2  ;;  %v457_v9 = vld [vmem:[#allocation5 + $0x20] sm:$0xff]  ;;  %v459_v10 = vld [vmem:[#allocation5 + $0x30] sm:$0xff]  ;;  %s2208_s15 = sld [smem:[#allocation19_spill]]  ;;  %s992_s9 = scalar_lea.sflag [#allocation4], %s2016_s20 }
  0xa1   : > { %v1265_v8 = vpack.c.bf16 %v460_v6, %v458_v5  ;;  %v462_v11 = vld [vmem:[#allocation5 + $0x48] sm:$0xff]  ;;  %1262 = vmatprep.subr.bf16.mxu0 %v1261_v3  ;;  %v464_v12 = vld [vmem:[#allocation5 + $0x58] sm:$0xff]  ;;  %v1267_v13 = vpack.c.bf16 %v459_v10, %v457_v9  ;;  %v461_v15 = vld [vmem:[#allocation5 + $0x40] sm:$0xff]  ;;  %s1672_s13 = scalar_lea.vmem %s2119_s19, 256  ;;  %s1757_s30 = smov [#allocation11]  }
  0xa2   : > { %1264 = vmatpush1.bf16.msra.mxu0 %v1263_v7  ;;  %v1269_v14 = vpack.c.bf16 %v464_v12, %v462_v11  ;;  %v463_v16 = vld [vmem:[#allocation5 + $0x50] sm:$0xff]  ;;  %v466_v17 = vld [vmem:[#allocation5 + $0x68] sm:$0xff]  ;;  %v468_v18 = vld [vmem:[#allocation5 + $0x78] sm:$0xff]  ;;  %p1673_p8 = scmp.ne.s32.totalorder %s2119_s19, %s1672_s13  ;;  %s1676_s21 = sshll.u32 %s1757_s30, 4  ;;  %s1677_s21 = int_to_ptr.vmem [resolvable:$false] %s1676_s21 }
  0xa3   : > { %1266 = vmatprep.subr.bf16.mxu0 %v1265_v8  ;;  %v1271_v19 = vpack.c.bf16 %v463_v16, %v461_v15  ;;  %v1273_v20 = vpack.c.bf16 %v468_v18, %v466_v17  ;;  %v465_v21 = vld [vmem:[#allocation5 + $0x60] sm:$0xff]  ;;  %v467_v22 = vld [vmem:[#allocation5 + $0x70] sm:$0xff]  ;;  %v470_v23 = vld [vmem:[#allocation5 + $0x88] sm:$0xff]  ;;  %s1678_s29 = scalar_lea.vmem %s1677_s21, 512  ;;  %p1679_p3 = scmp.lt.s32.totalorder %s2119_s19, %s1677_s21 }
  0xa4   : > { %v472_v24 = vld [vmem:[#allocation5 + $0x98] sm:$0xff]  ;;  %v1275_v25 = vpack.c.bf16 %v467_v22, %v465_v21  ;;  %v469_v27 = vld [vmem:[#allocation5 + $0x80] sm:$0xff]  ;;  %v471_v28 = vld [vmem:[#allocation5 + $0x90] sm:$0xff]  ;;  %p1674_p10 = pnand %p1673_p8, %p1961_p6  ;;  %p1680_p7 = scmp.lt.s32.totalorder %s1678_s29, %s1672_s13 }
  0xa5   : > { %v1277_v26 = vpack.c.bf16 %v472_v24, %v470_v23  ;;  %v474_v29 = vld [vmem:[#allocation5 + $0xa8] sm:$0xff]  ;;  %v476_v30 = vld [vmem:[#allocation5 + $0xb8] sm:$0xff]  ;;  %v1279_v31 = vpack.c.bf16 %v471_v28, %v469_v27  ;;  %v473_v33 = vld [vmem:[#allocation5 + $0xa0] sm:$0xff] }
  0xa6   : > { %1268 = vmatpush1.bf16.msra.mxu0 %v1267_v13  ;;  %v1281_v32 = vpack.c.bf16 %v476_v30, %v474_v29  ;;  %v475_v34 = vld [vmem:[#allocation5 + $0xb0] sm:$0xff]  ;;  %v478_v35 = vld [vmem:[#allocation5 + $0xc8] sm:$0xff]  ;;  %v480_v36 = vld [vmem:[#allocation5 + $0xd8] sm:$0xff]  ;;  %s2125_s17 = scalar_lea.hbm %s2208_s15, %s1146_s24  ;;  %p1675_p12 = pneg %p1674_p10 }
  0xa7   : > { %1270 = vmatprep.subr.bf16.mxu0 %v1269_v14  ;;  %v1283_v37 = vpack.c.bf16 %v475_v34, %v473_v33  ;;  %v477_v38 = vld [vmem:[#allocation5 + $0xc0] sm:$0xff]  ;;  %v479_v39 = vld [vmem:[#allocation5 + $0xd0] sm:$0xff]  ;;  %v1285_v40 = vpack.c.bf16 %v480_v36, %v478_v35  ;;  %v482_v41 = vld [vmem:[#allocation5 + $0xe8] sm:$0xff]  ;;  %p1681_p9 = por %p1680_p7, %p1679_p3 }
  0xa8   : > { %v484_v42 = vld [vmem:[#allocation5 + $0xf8] sm:$0xff]  ;;  %v2037_v43 = vld [vmem:[%s2022_s18] sm:$0xff]  ;;  %v631_v45 = vld [vmem:[#allocation7 + $0x88] sm:$0xff]  ;;  %v1287_v51 = vpack.c.bf16 %v479_v39, %v477_v38 }
  0xa9   : > { %593 = vmatprep.mubr.f32.mxu0 %v2037_v43  ;;  %v630_v44 = vld [vmem:[#allocation7 + $0x80] sm:$0xff]  ;;  %v615_v48 = vld [vmem:[#allocation7 + $0x8] sm:$0xff]  ;;  %v632_v49 = vld [vmem:[#allocation7 + $0x90] sm:$0xff]  ;;  %v1289_v57 = vpack.c.bf16 %v484_v42, %v482_v41  ;;  %p1682_p13 = pnand %p1681_p9, %p1675_p12 }
  0xaa   : > { %1272 = vmatpush1.bf16.msra.mxu0 %v1271_v19  ;;  %v614_v46 = vld [vmem:[#allocation7] sm:$0xff]  ;;  %v1325_v47 = vpack.c.bf16 %v631_v45, %v630_v44  ;;  %v633_v50 = vld [vmem:[#allocation7 + $0x98] sm:$0xff]  ;;  %v616_v54 = vld [vmem:[#allocation7 + $0x10] sm:$0xff] }
  0xab   : > { %1274 = vmatprep.subr.bf16.mxu0 %v1273_v20  ;;  %v1327_v52 = vpack.c.bf16 %v615_v48, %v614_v46  ;;  %v1329_v53 = vpack.c.bf16 %v633_v50, %v632_v49  ;;  %v617_v55 = vld [vmem:[#allocation7 + $0x18] sm:$0xff]  ;;  %v634_v56 = vld [vmem:[#allocation7 + $0xa0] sm:$0xff]  ;;  %v483_v59 = vld [vmem:[#allocation5 + $0xf0] sm:$0xff] }
  0xac   : > { %v481_v58 = vld [vmem:[#allocation5 + $0xe0] sm:$0xff]  ;;  %1326 = vmatprep.subr.bf16.mxu1 %v1325_v47  ;;  %v635_v60 = vld [vmem:[#allocation7 + $0xa8] sm:$0xff]  ;;  %v488_v62 = vld [vmem:[#allocation5 + $0x118] sm:$0xff]  ;;  %v1331_v63 = vpack.c.bf16 %v617_v55, %v616_v54  ;;  %v413_v54 = vlaneseq }
  0xad   : > { %v486_v61 = vld [vmem:[#allocation5 + $0x108] sm:$0xff]  ;;  %1328 = vmatpush3.bf16.msra.mxu1 %v1327_v52  ;;  %v1333_v0 = vpack.c.bf16 %v635_v60, %v634_v56  ;;  %v618_v1 = vld [vmem:[#allocation7 + $0x20] sm:$0xff]  ;;  %v1291_v3 = vpack.c.bf16 %v483_v59, %v481_v58  ;;  %v636_v4 = vld [vmem:[#allocation7 + $0xb0] sm:$0xff] }
  0xae   : > { %1276 = vmatpush1.bf16.msra.mxu0 %v1275_v25  ;;  %1330 = vmatprep.subr.bf16.mxu1 %v1329_v53  ;;  %v619_v2 = vld [vmem:[#allocation7 + $0x28] sm:$0xff]  ;;  %v637_v5 = vld [vmem:[#allocation7 + $0xb8] sm:$0xff]  ;;  %v1293_v6 = vpack.c.bf16 %v488_v62, %v486_v61  ;;  %v485_v7 = vld [vmem:[#allocation5 + $0x100] sm:$0xff]  ;;  %v2040_v61 = vshrl.u32 %v413_v54, 7 }
  0xaf   : > { %1278 = vmatprep.subr.bf16.mxu0 %v1277_v26  ;;  %v487_v8 = vld [vmem:[#allocation5 + $0x110] sm:$0xff]  ;;  %v490_v9 = vld [vmem:[#allocation5 + $0x128] sm:$0xff]  ;;  %v492_v10 = vld [vmem:[#allocation5 + $0x138] sm:$0xff]  ;;  %v1335_v11 = vpack.c.bf16 %v619_v2, %v618_v1  ;;  %v1337_v12 = vpack.c.bf16 %v637_v5, %v636_v4 }
  0xb0   : > { %v620_v13 = vld [vmem:[#allocation7 + $0x30] sm:$0xff]  ;;  %v621_v14 = vld [vmem:[#allocation7 + $0x38] sm:$0xff]  ;;  %v1295_v15 = vpack.c.bf16 %v487_v8, %v485_v7  ;;  %v638_v16 = vld [vmem:[#allocation7 + $0xc0] sm:$0xff]  ;;  %v1297_v18 = vpack.c.bf16 %v492_v10, %v490_v9  ;;  %v420_v4 = vand.u32 15, %v2040_v61  ;;  %vm442_vm0 = vcmp.lt.s32.totalorder %v2040_v61, 1 }
  0xb1   : > { %1332 = vmatpush3.bf16.msra.mxu1 %v1331_v63  ;;  %v639_v17 = vld [vmem:[#allocation7 + $0xc8] sm:$0xff]  ;;  %v489_v19 = vld [vmem:[#allocation5 + $0x120] sm:$0xff]  ;;  %v491_v20 = vld [vmem:[#allocation5 + $0x130] sm:$0xff]  ;;  %v1339_v23 = vpack.c.bf16 %v621_v14, %v620_v13  ;;  %vm736_vm2 = vcmp.lt.s32.totalorder %v2040_v61, 2 }
  0xb2   : > { %1280 = vmatpush1.bf16.msra.mxu0 %v1279_v31  ;;  %1334 = vmatprep.subr.bf16.mxu1 %v1333_v0  ;;  %v494_v21 = vld [vmem:[#allocation5 + $0x148] sm:$0xff]  ;;  %v496_v22 = vld [vmem:[#allocation5 + $0x158] sm:$0xff]  ;;  %v1341_v24 = vpack.c.bf16 %v639_v17, %v638_v16  ;;  %v622_v25 = vld [vmem:[#allocation7 + $0x40] sm:$0xff]  ;;  %v1299_v27 = vpack.c.bf16 %v491_v20, %v489_v19  ;;  %vm2050_vm1 = vcmp.ge.s32.totalorder %v420_v4, 1  ;;  %vm2090_vm3 = vcmp.ge.s32.totalorder %v420_v4, 2 }
  0xb3   : > { %1282 = vmatprep.subr.bf16.mxu0 %v1281_v32  ;;  %v623_v26 = vld [vmem:[#allocation7 + $0x48] sm:$0xff]  ;;  %v1301_v28 = vpack.c.bf16 %v496_v22, %v494_v21  ;;  %v493_v29 = vld [vmem:[#allocation5 + $0x140] sm:$0xff]  ;;  %v495_v30 = vld [vmem:[#allocation5 + $0x150] sm:$0xff] }
  0xb4   : > { %v498_v31 = vld [vmem:[#allocation5 + $0x168] sm:$0xff]  ;;  %v500_v32 = vld [vmem:[#allocation5 + $0x178] sm:$0xff]  ;;  %v1343_v33 = vpack.c.bf16 %v623_v26, %v622_v25  ;;  %v1303_v34 = vpack.c.bf16 %v495_v30, %v493_v29  ;;  %v497_v36 = vld [vmem:[#allocation5 + $0x160] sm:$0xff]  ;;  %v521_v29 = vsub.s32 0, %v2040_v61 }
  0xb5   : > { %1336 = vmatpush3.bf16.msra.mxu1 %v1335_v11  ;;  %v1305_v35 = vpack.c.bf16 %v500_v32, %v498_v31  ;;  %v502_v38 = vld [vmem:[#allocation5 + $0x188] sm:$0xff]  ;;  %v504_v39 = vld [vmem:[#allocation5 + $0x198] sm:$0xff]  ;;  %v501_v42 = vld [vmem:[#allocation5 + $0x180] sm:$0xff] }
  0xb6   : > { %1284 = vmatpush1.bf16.msra.mxu0 %v1283_v37  ;;  %1338 = vmatprep.subr.bf16.mxu1 %v1337_v12  ;;  %v499_v37 = vld [vmem:[#allocation5 + $0x170] sm:$0xff]  ;;  %v1309_v41 = vpack.c.bf16 %v504_v39, %v502_v38  ;;  %v506_v45 = vld [vmem:[#allocation5 + $0x1a8] sm:$0xff]  ;;  %v508_v46 = vld [vmem:[#allocation5 + $0x1b8] sm:$0xff] }
  0xb7   : > { %1286 = vmatprep.subr.bf16.mxu0 %v1285_v40  ;;  %v1307_v40 = vpack.c.bf16 %v499_v37, %v497_v36  ;;  %v503_v44 = vld [vmem:[#allocation5 + $0x190] sm:$0xff]  ;;  %v1313_v48 = vpack.c.bf16 %v508_v46, %v506_v45  ;;  %v505_v49 = vld [vmem:[#allocation5 + $0x1a0] sm:$0xff]  ;;  %v512_v52 = vld [vmem:[#allocation5 + $0x1d8] sm:$0xff] }
  0xb8   : > { %v1311_v47 = vpack.c.bf16 %v503_v44, %v501_v42  ;;  %v507_v50 = vld [vmem:[#allocation5 + $0x1b0] sm:$0xff]  ;;  %v509_v56 = vld [vmem:[#allocation5 + $0x1c0] sm:$0xff]  ;;  %v514_v58 = vld [vmem:[#allocation5 + $0x1e8] sm:$0xff] }
  0xb9   : > { %1340 = vmatpush3.bf16.msra.mxu1 %v1339_v23  ;;  %v1315_v53 = vpack.c.bf16 %v507_v50, %v505_v49  ;;  %v516_v59 = vld [vmem:[#allocation5 + $0x1f8] sm:$0xff]  ;;  %v513_v63 = vld [vmem:[#allocation5 + $0x1e0] sm:$0xff]  ;;  %v515_v0 = vld [vmem:[#allocation5 + $0x1f0] sm:$0xff] }
  0xba   : > { %1288 = vmatpush1.bf16.msra.mxu0 %v1287_v51  ;;  %1342 = vmatprep.subr.bf16.mxu1 %v1341_v24  ;;  %v510_v51 = vld [vmem:[#allocation5 + $0x1c8] sm:$0xff]  ;;  %v1321_v62 = vpack.c.bf16 %v516_v59, %v514_v58  ;;  %v1323_v2 = vpack.c.bf16 %v515_v0, %v513_v63  ;;  %v640_v8 = vld [vmem:[#allocation7 + $0xd0] sm:$0xff]  ;;  %v641_v9 = vld [vmem:[#allocation7 + $0xd8] sm:$0xff] }
  0xbb   : > { %1290 = vmatprep.subr.bf16.mxu0 %v1289_v57  ;;  %v1317_v55 = vpack.c.bf16 %v512_v52, %v510_v51  ;;  %v511_v57 = vld [vmem:[#allocation5 + $0x1d0] sm:$0xff]  ;;  %v412_v1 = vld [vmem:[%s2022_s18 + $0x8] sm:$0xff]  ;;  %v1345_v10 = vpack.c.bf16 %v641_v9, %v640_v8  ;;  %v642_v14 = vld [vmem:[#allocation7 + $0xe0] sm:$0xff] }
  0xbc   : > { %v1319_v60 = vpack.c.bf16 %v511_v57, %v509_v56  ;;  %v441_v5 = vrot.slane %v412_v1, 7  ;;  %v624_v11 = vld [vmem:[#allocation7 + $0x50] sm:$0xff]  ;;  %v625_v12 = vld [vmem:[#allocation7 + $0x58] sm:$0xff]  ;;  %v626_v17 = vld [vmem:[#allocation7 + $0x60] sm:$0xff] }
  0xbd   : > { %1344 = vmatpush3.bf16.msra.mxu1 %v1343_v33  ;;  %v1347_v13 = vpack.c.bf16 %v625_v12, %v624_v11  ;;  %v644_v20 = vld [vmem:[#allocation7 + $0xf0] sm:$0xff]  ;;  %v645_v21 = vld [vmem:[#allocation7 + $0xf8] sm:$0xff]  ;;  %v763_v26 = vld [vmem:[#allocation8 + $0x80] sm:$0xff] }
  0xbe   : > { %1292 = vmatpush1.bf16.msra.mxu0 %v1291_v3  ;;  %v440_v3 = vrot.slane %v2037_v43, 7  ;;  %1346 = vmatprep.subr.bf16.mxu1 %v1345_v10  ;;  %v1353_v22 = vpack.c.bf16 %v645_v21, %v644_v20  ;;  %v628_v23 = vld [vmem:[#allocation7 + $0x70] sm:$0xff]  ;;  %v629_v24 = vld [vmem:[#allocation7 + $0x78] sm:$0xff]  ;;  %v2062_v30 = vld [vmem:[%s2171_s2] sm:$0x3] }
  0xbf   : > { %1294 = vmatprep.subr.bf16.mxu0 %v1293_v6  ;;  %v1355_v25 = vpack.c.bf16 %v629_v24, %v628_v23  ;;  %v522_v31 = vrot.slane %v2062_v30, %v521_v29  ;;  %v747_v39 = vld [vmem:[#allocation8] sm:$0xff]  ;;  %v765_v42 = vld [vmem:[#allocation8 + $0x90] sm:$0xff]  ;;  %v766_v44 = vld [vmem:[#allocation8 + $0x98] sm:$0xff] }
  0xc0   : > { %v444_v6 = vsel %vm442_vm0, %v441_v5, %v440_v3  ;;  %v443_v43 = vsel %vm442_vm0, %v440_v3, %v441_v5  ;;  %v749_v49 = vld [vmem:[#allocation8 + $0x10] sm:$0xff]  ;;  %v750_v50 = vld [vmem:[#allocation8 + $0x18] sm:$0xff]  ;;  %v768_v54 = vld [vmem:[#allocation8 + $0xa8] sm:$0xff] }
  0xc1   : > { %1348 = vmatpush3.bf16.msra.mxu1 %v1347_v13  ;;  %v751_v57 = vld [vmem:[#allocation8 + $0x20] sm:$0xff]  ;;  %v752_v58 = vld [vmem:[#allocation8 + $0x28] sm:$0xff]  ;;  %v769_v59 = vld [vmem:[#allocation8 + $0xb0] sm:$0xff] }
  0xc2   : > { %1296 = vmatpush1.bf16.msra.mxu0 %v1295_v15  ;;  %v643_v15 = vld [vmem:[#allocation7 + $0xe8] sm:$0xff]  ;;  %v753_v0 = vld [vmem:[#allocation8 + $0x30] sm:$0xff]  ;;  %v771_v3 = vld [vmem:[#allocation8 + $0xc0] sm:$0xff] }
  0xc3   : > { %1298 = vmatprep.subr.bf16.mxu0 %v1297_v18  ;;  %v1349_v16 = vpack.c.bf16 %v643_v15, %v642_v14  ;;  %v627_v18 = vld [vmem:[#allocation7 + $0x68] sm:$0xff]  ;;  %v755_v7 = vld [vmem:[#allocation8 + $0x40] sm:$0xff]  ;;  %v773_v9 = vld [vmem:[#allocation8 + $0xd0] sm:$0xff] }
  0xc4   : > { %v1351_v19 = vpack.c.bf16 %v627_v18, %v626_v17  ;;  %v772_v5 = vld [vmem:[#allocation8 + $0xc8] sm:$0xff]  ;;  %v774_v10 = vld [vmem:[#allocation8 + $0xd8] sm:$0xff]  ;;  %v757_v12 = vld [vmem:[#allocation8 + $0x50] sm:$0xff] }
  0xc5   : > { %1350 = vmatprep.subr.bf16.mxu1 %v1349_v16  ;;  %v1377_v11 = vpack.c.bf16 %v774_v10, %v773_v9  ;;  %v758_v13 = vld [vmem:[#allocation8 + $0x58] sm:$0xff]  ;;  %v775_v15 = vld [vmem:[#allocation8 + $0xe0] sm:$0xff]  ;;  %v776_v16 = vld [vmem:[#allocation8 + $0xe8] sm:$0xff] }
  0xc6   : > { %1300 = vmatpush1.bf16.msra.mxu0 %v1299_v27  ;;  %1352 = vmatpush3.bf16.msra.mxu1 %v1351_v19  ;;  %v764_v27 = vld [vmem:[#allocation8 + $0x88] sm:$0xff]  ;;  %v1379_v14 = vpack.c.bf16 %v758_v13, %v757_v12  ;;  %v1381_v17 = vpack.c.bf16 %v776_v16, %v775_v15  ;;  %v759_v18 = vld [vmem:[#allocation8 + $0x60] sm:$0xff]  ;;  %v777_v21 = vld [vmem:[#allocation8 + $0xf0] sm:$0xff] }
  0xc7   : > { %1302 = vmatprep.subr.bf16.mxu0 %v1301_v28  ;;  %1354 = vmatprep.subr.bf16.mxu1 %v1353_v22  ;;  %v1357_v28 = vpack.c.bf16 %v764_v27, %v763_v26  ;;  %v760_v19 = vld [vmem:[#allocation8 + $0x68] sm:$0xff]  ;;  %v778_v22 = vld [vmem:[#allocation8 + $0xf8] sm:$0xff]  ;;  %v761_v24 = vld [vmem:[#allocation8 + $0x70] sm:$0xff] }
  0xc8   : > { %v1383_v20 = vpack.c.bf16 %v760_v19, %v759_v18  ;;  %v1385_v23 = vpack.c.bf16 %v778_v22, %v777_v21  ;;  %v885_v27 = vld [vmem:[#allocation10 + $0x80] sm:$0xff]  ;;  %v878_v16 = vld [vmem:[#allocation10 + $0x48] sm:$0xff]  ;;  %v895_v18 = vld [vmem:[#allocation10 + $0xd0] sm:$0xff] }
  0xc9   : > { %v869_v29 = vld [vmem:[#allocation10] sm:$0xff]  ;;  %v896_v19 = vld [vmem:[#allocation10 + $0xd8] sm:$0xff]  ;;  %v879_v21 = vld [vmem:[#allocation10 + $0x50] sm:$0xff] }
  0xca   : > { %1304 = vmatpush1.bf16.msra.mxu0 %v1303_v34  ;;  %1356 = vmatpush3.bf16.msra.mxu1 %v1355_v25  ;;  %v762_v25 = vld [vmem:[#allocation8 + $0x78] sm:$0xff]  ;;  %v877_v15 = vld [vmem:[#allocation10 + $0x40] sm:$0xff] }
  0xcb   : > { %1306 = vmatprep.subr.bf16.mxu0 %v1305_v35  ;;  %1358 = vmatprep.subr.bf16.mxu1 %v1357_v28  ;;  %v1387_v26 = vpack.c.bf16 %v762_v25, %v761_v24  ;;  %v886_v28 = vld [vmem:[#allocation10 + $0x88] sm:$0xff]  ;;  %v880_v22 = vld [vmem:[#allocation10 + $0x58] sm:$0xff]  ;;  %v897_v24 = vld [vmem:[#allocation10 + $0xe0] sm:$0xff] }
  0xcc   : > { %v898_v25 = vld [vmem:[#allocation10 + $0xe8] sm:$0xff] }
  0xce   : > { %1308 = vmatpush1.bf16.msra.mxu0 %v1307_v40  ;;  %v748_v40 = vld [vmem:[#allocation8 + $0x8] sm:$0xff] }
  0xcf   : > { %1310 = vmatprep.subr.bf16.mxu0 %v1309_v41 }
  0xd2   : > { %1312 = vmatpush1.bf16.msra.mxu0 %v1311_v47  ;;  %v1359_v47 = vpack.c.bf16 %v748_v40, %v747_v39  ;;  %v871_v39 = vld [vmem:[#allocation10 + $0x10] sm:$0xff]  ;;  %v872_v40 = vld [vmem:[#allocation10 + $0x18] sm:$0xff] }
  0xd3   : > { %1314 = vmatprep.subr.bf16.mxu0 %v1313_v48  ;;  %v1361_v48 = vpack.c.bf16 %v766_v44, %v765_v42  ;;  %v890_v42 = vld [vmem:[#allocation10 + $0xa8] sm:$0xff]  ;;  %v1395_v44 = vpack.c.bf16 %v872_v40, %v871_v39  ;;  %v1136_v40 = vld [vmem:[%s2175_s6] ss:$0 sm:$0xff] }
  0xd6   : > { %1316 = vmatpush1.bf16.msra.mxu0 %v1315_v53  ;;  %v767_v53 = vld [vmem:[#allocation8 + $0xa0] sm:$0xff] }
  0xd7   : > { %1318 = vmatprep.subr.bf16.mxu0 %v1317_v55  ;;  %v1363_v55 = vpack.c.bf16 %v750_v50, %v749_v49  ;;  %v1365_v56 = vpack.c.bf16 %v768_v54, %v767_v53  ;;  %v892_v49 = vld [vmem:[#allocation10 + $0xb8] sm:$0xff]  ;;  %v893_v54 = vld [vmem:[#allocation10 + $0xc0] sm:$0xff] }
  0xd8   : > { %v876_v53 = vld [vmem:[#allocation10 + $0x38] sm:$0xff] }
  0xda   : > { %1320 = vmatpush1.bf16.msra.mxu0 %v1319_v60  ;;  %v770_v60 = vld [vmem:[#allocation8 + $0xb8] sm:$0xff] }
  0xdb   : > { %1322 = vmatprep.subr.bf16.mxu0 %v1321_v62  ;;  %v1367_v62 = vpack.c.bf16 %v752_v58, %v751_v57  ;;  %v1369_v63 = vpack.c.bf16 %v770_v60, %v769_v59  ;;  %v525_v58 = vsub.s32 1, %v2040_v61  ;;  %v1134_v60 = vld [vmem:[%s2173_s4] ss:$0 sm:$0xff] }
  0xde   : > { %1324 = vmatpush1.bf16.msra.mxu0 %v1323_v2 }
  0xe1   : > { %1133 = vmatmul.mubr.msk.f32.vlgmr.msra.gmra.mrb[0].mxu0 %vm2050_vm1, %v444_v6  ;;  %v1373_v6 = vpack.c.bf16 %v772_v5, %v771_v3 }
  0xe2   : > { %599 = vmatprep.mubr.f32.mxu0 %v412_v1  ;;  %v754_v1 = vld [vmem:[#allocation8 + $0x38] sm:$0xff] }
  0xe3   : > { %v1371_v2 = vpack.c.bf16 %v754_v1, %v753_v0 }
  0xe5   : > { %600 = vmatmul.mubr.f32.gmra.mrb[2].mxu0 %v443_v43  ;;  %v756_v43 = vld [vmem:[#allocation8 + $0x48] sm:$0xff] }
  0xe6   : > { %v1375_v8 = vpack.c.bf16 %v756_v43, %v755_v7 }
 0x1b4   : > { %v595_v32 = vpop.f32.mrb[0].mxu0 }
 0x1b5   : > { %v596_v33 = vadd.f32 %v595_v32, %v522_v31  ;;  %v2065_v34 = vpop.f32.mrb[1].mxu0  ;;  %v870_v32 = vld [vmem:[#allocation10 + $0x8] sm:$0xff] }
 0x1b7   : > { %v606_v35 = vmax.f32 %v596_v33, 0.0  ;;  %v887_v33 = vld [vmem:[#allocation10 + $0x90] sm:$0xff] }
 0x1b8   : > { %v601_v36 = vpop.f32.mrb[2].mxu0 }
 0x1b9   : > { %v602_v37 = vadd.f32 %v601_v36, %v522_v31  ;;  %v2067_v38 = vpop.f32.mrb[3].mxu0  ;;  %717 = vmatprep.mubr.f32.mxu1 %v606_v35  ;;  %v608_v45 = vrot.slane %v606_v35, 7  ;;  %v1389_v31 = vpack.c.bf16 %v886_v28, %v885_v27  ;;  %v888_v35 = vld [vmem:[#allocation10 + $0x98] sm:$0xff]  ;;  %v1391_v36 = vpack.c.bf16 %v870_v32, %v869_v29  ;;  %v881_v27 = vld [vmem:[#allocation10 + $0x60] sm:$0xff]  ;;  %v882_v28 = vld [vmem:[#allocation10 + $0x68] sm:$0xff] }
 0x1ba   : > { %v1415_v29 = vpack.c.bf16 %v882_v28, %v881_v27  ;;  %v900_v32 = vld [vmem:[#allocation10 + $0xf8] sm:$0xff] }
 0x1bb   : > { %v607_v41 = vmax.f32 %v602_v37, 0.0  ;;  %v1393_v37 = vpack.c.bf16 %v888_v35, %v887_v33  ;;  %1390 = vmatprep.subr.bf16.mxu0 %v1389_v31  ;;  %v883_v35 = vld [vmem:[#allocation10 + $0x70] sm:$0xff] }
 0x1bc   : > { %1392 = vmatpush3.bf16.msra.mxu0 %v1391_v36 }
 0x1bd   : > { %v609_v46 = vrot.slane %v607_v41, 7  ;;  %1394 = vmatprep.subr.bf16.mxu0 %v1393_v37 }
 0x1bf   : > { %v611_v51 = vsel %vm442_vm0, %v609_v46, %v608_v45  ;;  %v610_v52 = vsel %vm442_vm0, %v608_v45, %v609_v46  ;;  %v873_v46 = vld [vmem:[#allocation10 + $0x20] sm:$0xff] }
 0x1c0   : > { %1135 = vmatmul.mubr.msk.f32.vlgmr.msra.gmra.mrb[0].mxu1 %vm2050_vm1, %v611_v51  ;;  %1396 = vmatpush3.bf16.msra.mxu0 %v1395_v44 }
 0x1c1   : > { %722 = vmatprep.mubr.f32.mxu1 %v607_v41  ;;  %1360 = vmatpush3.bf16.msra.mxu1 %v1359_v47  ;;  %v889_v41 = vld [vmem:[#allocation10 + $0xa0] sm:$0xff]  ;;  %v874_v47 = vld [vmem:[#allocation10 + $0x28] sm:$0xff] }
 0x1c2   : > { %1362 = vmatprep.subr.bf16.mxu1 %v1361_v48  ;;  %v1397_v45 = vpack.c.bf16 %v890_v42, %v889_v41  ;;  %v891_v48 = vld [vmem:[#allocation10 + $0xb0] sm:$0xff]  ;;  %v1399_v50 = vpack.c.bf16 %v874_v47, %v873_v46 }
 0x1c3   : > { %v1401_v51 = vpack.c.bf16 %v892_v49, %v891_v48 }
 0x1c4   : > { %723 = vmatmul.mubr.f32.gmra.mrb[2].mxu1 %v610_v52  ;;  %1398 = vmatprep.subr.bf16.mxu0 %v1397_v45  ;;  %v875_v52 = vld [vmem:[#allocation10 + $0x30] sm:$0xff] }
 0x1c5   : > { %1364 = vmatpush3.bf16.msra.mxu1 %v1363_v55  ;;  %v894_v55 = vld [vmem:[#allocation10 + $0xc8] sm:$0xff]  ;;  %1400 = vmatpush3.bf16.msra.mxu0 %v1399_v50 }
 0x1c6   : > { %1366 = vmatprep.subr.bf16.mxu1 %v1365_v56  ;;  %v1403_v56 = vpack.c.bf16 %v876_v53, %v875_v52  ;;  %1402 = vmatprep.subr.bf16.mxu0 %v1401_v51  ;;  %v1405_v57 = vpack.c.bf16 %v894_v55, %v893_v54 }
 0x1c9   : > { %1368 = vmatpush3.bf16.msra.mxu1 %v1367_v62  ;;  %1404 = vmatpush3.bf16.msra.mxu0 %v1403_v56 }
 0x1ca   : > { %1370 = vmatprep.subr.bf16.mxu1 %v1369_v63  ;;  %1406 = vmatprep.subr.bf16.mxu0 %v1405_v57  ;;  %v526_v63 = vrot.slane %v2062_v30, %v525_v58 }
 0x1cc   : > { %v598_v5 = vadd.f32 %v2065_v34, %v526_v63  ;;  %v604_v9 = vadd.f32 %v2067_v38, %v526_v63 }
 0x1cd   : > { %1372 = vmatpush3.bf16.msra.mxu1 %v1371_v2 }
 0x1ce   : > { %1374 = vmatprep.subr.bf16.mxu1 %v1373_v6 }
 0x1d1   : > { %1376 = vmatpush3.bf16.msra.mxu1 %v1375_v8 }
 0x1d2   : > { %1378 = vmatprep.subr.bf16.mxu1 %v1377_v11 }
 0x1d5   : > { %1380 = vmatpush3.bf16.msra.mxu1 %v1379_v14 }
 0x1d6   : > { %1382 = vmatprep.subr.bf16.mxu1 %v1381_v17  ;;  %v1407_v17 = vpack.c.bf16 %v878_v16, %v877_v15 }
 0x1d8   : > { %1408 = vmatpush3.bf16.msra.mxu0 %v1407_v17 }
 0x1d9   : > { %1384 = vmatpush3.bf16.msra.mxu1 %v1383_v20  ;;  %v1409_v20 = vpack.c.bf16 %v896_v19, %v895_v18 }
 0x1da   : > { %1386 = vmatprep.subr.bf16.mxu1 %v1385_v23  ;;  %v1411_v23 = vpack.c.bf16 %v880_v22, %v879_v21 }
 0x1db   : > { %1410 = vmatprep.subr.bf16.mxu0 %v1409_v20 }
 0x1dc   : > { %1412 = vmatpush3.bf16.msra.mxu0 %v1411_v23 }
 0x1dd   : > { %1388 = vmatpush3.bf16.msra.mxu1 %v1387_v26  ;;  %v1413_v26 = vpack.c.bf16 %v898_v25, %v897_v24 }
 0x1de   : > { %1421 = vmatprep.subr.bf16.mxu1 %v1389_v31  ;;  %v899_v31 = vld [vmem:[#allocation10 + $0xf0] sm:$0xff] }
 0x1df   : > { %1414 = vmatprep.subr.bf16.mxu0 %v1413_v26  ;;  %v1417_v33 = vpack.c.bf16 %v900_v32, %v899_v31 }
 0x1e0   : > { %1416 = vmatpush3.bf16.msra.mxu0 %v1415_v29 }
 0x1e1   : > { %1418 = vmatprep.subr.bf16.mxu0 %v1417_v33 }
 0x293   : > { %v1179_v59 = vpop.f32.mrb[0].mxu1 }
 0x294   : > { %v1180_v62 = vpop.f32.mrb[1].mxu1 }
 0x295   : > { %v1181_v0 = vadd.f32 %v1180_v62, %v1179_v59 }
 0x297   : > { %v720_v1 = vadd.f32 %v1181_v0, %v1134_v60  ;;  %v1182_v2 = vpop.f32.mrb[2].mxu1 }
 0x298   : > { %v1183_v3 = vpop.f32.mrb[3].mxu1 }
 0x299   : > { %v728_v6 = vmax.f32 %v720_v1, 0.0  ;;  %v1184_v7 = vadd.f32 %v1183_v3, %v1182_v2 }
 0x29b   : > { %v725_v43 = vadd.f32 %v1184_v7, %v1134_v60  ;;  %v730_v8 = vadd.f32 %v728_v6, %v598_v5 }
 0x29d   : > { %v729_v10 = vmax.f32 %v725_v43, 0.0  ;;  %v2082_v11 = vmax.f32 %v730_v8, 0.0 }
 0x29f   : > { %v731_v12 = vadd.f32 %v729_v10, %v604_v9  ;;  %850 = vmatprep.mubr.f32.mxu1 %v2082_v11  ;;  %v734_v38 = vrot.slane %v2082_v11, 6 }
 0x2a1   : > { %v2085_v13 = vmax.f32 %v731_v12, 0.0 }
 0x2a3   : > { %v735_v34 = vrot.slane %v2085_v13, 6 }
 0x2a5   : > { %v738_v14 = vsel %vm736_vm2, %v735_v34, %v734_v38  ;;  %v737_v4 = vsel %vm736_vm2, %v734_v38, %v735_v34 }
 0x2a6   : > { %1137 = vmatmul.mubr.msk.f32.vlgmr.msra.gmra.mrb[4].mxu1 %vm2090_vm3, %v738_v14 }
 0x2a7   : > { %855 = vmatprep.mubr.f32.mxu1 %v2085_v13  ;;  %1429 = vmatpush3.bf16.msra.mxu1 %v1391_v36  ;;  %v884_v36 = vld [vmem:[#allocation10 + $0x78] sm:$0xff] }
 0x2a8   : > { %1422 = vmatprep.subr.bf16.mxu1 %v1393_v37  ;;  %v1419_v37 = vpack.c.bf16 %v884_v36, %v883_v35 }
 0x2aa   : > { %856 = vmatmul.mubr.f32.gmra.mrb[6].mxu1 %v737_v4  ;;  %1420 = vmatpush3.bf16.msra.mxu0 %v1419_v37 }
 0x2ab   : > { %1430 = vmatpush3.bf16.msra.mxu1 %v1395_v44 }
 0x2ac   : > { %1423 = vmatprep.subr.bf16.mxu1 %v1397_v45 }
 0x2af   : > { %1431 = vmatpush3.bf16.msra.mxu1 %v1399_v50 }
 0x2b0   : > { %1424 = vmatprep.subr.bf16.mxu1 %v1401_v51 }
 0x2b3   : > { %1432 = vmatpush3.bf16.msra.mxu1 %v1403_v56 }
 0x2b4   : > { %1425 = vmatprep.subr.bf16.mxu1 %v1405_v57  ;;  %v1138_v57 = vld [vmem:[%s2207_s23] ss:$0 sm:$0xff] }
 0x2b7   : > { %1433 = vmatpush3.bf16.msra.mxu1 %v1407_v17 }
 0x2b8   : > { %1426 = vmatprep.subr.bf16.mxu1 %v1409_v20 }
 0x2bb   : > { %1434 = vmatpush3.bf16.msra.mxu1 %v1411_v23 }
 0x2bc   : > { %1427 = vmatprep.subr.bf16.mxu1 %v1413_v26 }
 0x2bf   : > { %1435 = vmatpush3.bf16.msra.mxu1 %v1415_v29 }
 0x2c0   : > { %1428 = vmatprep.subr.bf16.mxu1 %v1417_v33 }
 0x2c3   : > { %1436 = vmatpush3.bf16.msra.mxu1 %v1419_v37 }
 0x379   : > { %v1217_v39 = vpop.f32.mrb[4].mxu1 }
 0x37a   : > { %v1218_v41 = vpop.f32.mrb[5].mxu1 }
 0x37b   : > { %v1219_v42 = vadd.f32 %v1218_v41, %v1217_v39 }
 0x37d   : > { %v853_v44 = vadd.f32 %v1219_v42, %v1136_v40  ;;  %v1220_v45 = vpop.f32.mrb[6].mxu1 }
 0x37e   : > { %v1221_v46 = vpop.f32.mrb[7].mxu1 }
 0x37f   : > { %v861_v47 = vmax.f32 %v853_v44, 0.0  ;;  %v1222_v48 = vadd.f32 %v1221_v46, %v1220_v45 }
 0x381   : > { %v858_v49 = vadd.f32 %v1222_v48, %v1136_v40  ;;  %972 = vmatprep.mubr.f32.mxu0 %v861_v47  ;;  %v863_v51 = vrot.slane %v861_v47, 6 }
 0x383   : > { %v862_v50 = vmax.f32 %v858_v49, 0.0 }
 0x385   : > { %v864_v52 = vrot.slane %v862_v50, 6  ;;  %977 = vmatprep.mubr.f32.mxu1 %v862_v50 }
 0x387   : > { %v866_v53 = vsel %vm736_vm2, %v864_v52, %v863_v51  ;;  %v865_v54 = vsel %vm736_vm2, %v863_v51, %v864_v52 }
 0x388   : > { %1139 = vmatmul.mubr.msk.f32.vlgmr.msra.gmra.mrb[4].mxu0 %vm2090_vm3, %v866_v53  ;;  %978 = vmatmul.mubr.f32.vlgmr.msra.gmra.mrb[8].mxu1 %v865_v54 }
 0x45b   : > { %v1255_v55 = vpop.f32.mrb[4].mxu0  ;;  %v1258_v56 = vpop.f32.mrb[8].mxu1 }
 0x45c   : > { %v1256_v58 = vpop.f32.mrb[5].mxu0  ;;  %v1259_v59 = vpop.f32.mrb[9].mxu1 }
 0x45d   : > { %v1257_v60 = vadd.f32 %v1256_v58, %v1255_v55  ;;  %v1260_v62 = vadd.f32 %v1259_v59, %v1258_v56 }
 0x45f   : > { %v975_v63 = vadd.f32 %v1257_v60, %v1138_v57  ;;  %v980_v0 = vadd.f32 %v1260_v62, %v1138_v57 }
 0x461   : > { %v983_v61 = vmax.f32 %v975_v63, 0.0  ;;  %v984_v1 = vmax.f32 %v980_v0, 0.0 }
 0x463   : > { %v985_v2 = vadd.f32 %v983_v61, %v2082_v11  ;;  %v986_v3 = vadd.f32 %v984_v1, %v2085_v13 }
 0x465   : > { %v987_v5 = vmax.f32 %v985_v2, 0.0  ;;  %v988_v6 = vmax.f32 %v986_v3, 0.0 }
 0x467   : > { %989 = vst [vmem:[%s408_s14] sm:$0xff] %v987_v5  ;;  %990 = vst [vmem:[%s408_s14 + $0x8] sm:$0xff] %v988_v6 }
 0x468   : > { %1685 = shalt.err (!%p1682_p13)
}
 0x469   : > { %s1686_s27 = scalar_lea.hbm %s2125_s17, 256  ;;  %s1690_s23 = scalar_lea.hbm %s2208_s15, 512 }
 0x46a   : > { %p1687_p0 = scmp.ne.s32.totalorder %s2125_s17, %s1686_s27  ;;  %p1691_p1 = scmp.lt.u32.totalorder %s2125_s17, %s2208_s15 }
 0x46b   : > { %p1692_p2 = scmp.lt.u32.totalorder %s1690_s23, %s1686_s27  ;;  %p1694_p8 = scmp.lt.u32.totalorder %s1686_s27, %s2125_s17 }
 0x46c   : > { %p1688_p5 = pnand %p1687_p0, %p1961_p6 }
 0x46d   : > { %p1693_p4 = por %p1692_p2, %p1691_p1 }
 0x46e   : > { %p1689_p11 = pneg %p1688_p5 }
 0x46f   : > { %p1695_p10 = por %p1694_p8, %p1693_p4 }
 0x471   : > { %p1696_p12 = pnand %p1695_p10, %p1689_p11 }
 0x473   : > { %1699 = shalt.err (!%p1696_p12)
}
 0x474   : > { %s1758_s25 = smov 128   ;;  %s1759_s18 = smov 8  }
 0x475   : > { %1455 = dma.vmem_to_hbm [thread:$0]  (%p1961_p6), %s2119_s19, 256, %s2125_s17, %s992_s9, %s1758_s25, %s1758_s25, %s1759_s18  }
 0x476 PF: > { %s2209_s13 = sld [smem:[#allocation16_spill]]  ;;  %s2210_s30 = sld [smem:[#allocation17_spill]] }
 0x477   : > { %p2212_p7 = scmp.ge.s32.totalorder %s1746_s12, 2 }
 0x47c   : > { %s1020_s21 = sand.u32 1, %s2209_s13   ;;  %p2211_p3 = scmp.ne.s32.totalorder %s2210_s30, 0 }
 0x47d   : > { %s1021_s29 = scalar_lea.sflag [#allocation4], %s1020_s21 }
 0x47e   : > { %p1475_p9 = pnand %p2212_p7, %p2211_p3 }
 0x480   : > { %1729 = dma.done.wait (!%p1475_p9), %s1021_s29, 256  }
 0x481   : > { %1731 = vsyncadd (!%p1475_p9), %s1021_s29, 4294967040  ;;  %p24_p13 = scmp.ge.s32.totalorder %s1951_s28, 4   ;;  %s2213_s30 = smov %s1738_s10 }
 0x482   : > { %s2214_s10 = smov %s1742_s11  ;;  %s2215_s11 = smov %s1967_s16 }
 0x483   : > { %s2216_s12 = smov %s1951_s28  ;;  %26 = sbr.rel (!%p24_p13) target bundleno = 10 (0xa), region = 117 }
 0x48a   :  { %1026 = vsyncpa [#allocation3], 1 }
 0x48b   :  { %1028 = vsyncpa [#allocation3 + $0x1], 1 }
 0x48c   :  { %1029 = vsyncpa [#allocation6], 1 }
 0x48d   :  { %1030 = vsyncpa [#allocation9], 1 }
 0x48e   :  { %1031 = vsyncpa [#allocation4], 1 }
 0x48f   :  { %1033 = vsyncpa [#allocation4 + $0x1], 1 }

</bundles_post_ra>
